<compile_context>
chip_gen: v5e
topology: v5e:2x2
jax: 0.10.0
libtpu: 0.0.40
codegen_flags: <defaults>
</compile_context>

<pallas_src>
import functools

import jax
import jax.numpy as jnp
from jax.experimental import pallas as pl
from jax.experimental.pallas import tpu as pltpu


# ----------------------------------------------------------------------------- helpers


def _round_up(n: int, m: int) -> int:
    return ((n + m - 1) // m) * m


def _pad2(a, shape):
    pads = [(0, s - d) for s, d in zip(shape, a.shape)]
    if all(p == (0, 0) for p in pads):
        return a
    return jnp.pad(a, pads)


def _pick_tile(total_p: int, t_max: int, prefer_multi: bool = False) -> int:
    """Largest 128-multiple tile that divides total_p (a multiple of 128) and is <= t_max.

    With prefer_multi=True, tiles yielding >= 2 grid steps are preferred so the
    'parallel' axis can be sharded across both v7x TensorCores.
    """
    k = total_p // 128
    t_max = max(t_max, 128)
    divs = [d for d in range(1, k + 1) if k % d == 0 and 128 * d <= t_max]
    if prefer_multi:
        multi = [d for d in divs if k // d >= 2]
        if multi:
            divs = multi
    return 128 * max(divs)


def _vmem_capacity_bytes() -> int:
    try:
        return int(pltpu.get_tpu_info().vmem_capacity_bytes)
    except Exception:
        return 64 * 1024 * 1024  # conservative (v7x per-core physical VMEM)


def _weight_spec(block_shape, index_map, extra_buffer: bool):
    """BlockSpec for a streamed weight block; 3-deep pipelining in the GEMV regime."""
    if extra_buffer and hasattr(pl, "Buffered"):
        try:
            return pl.BlockSpec(block_shape, index_map, pipeline_mode=pl.Buffered(3))
        except TypeError:
            pass
    return pl.BlockSpec(block_shape, index_map)


# ----------------------------------------------------------------------------- kernels


def _mlp_resident_kernel(x_ref, w1_ref, b1_ref, w2_ref, b2_ref, o_ref, *, approximate_gelu):
    # fc1: (tm, Din_p) @ (Din_p, H_p), f32 accumulate on the MXU.
    h = jnp.dot(x_ref[...], w1_ref[...], preferred_element_type=jnp.float32)
    h = jax.nn.gelu(h + b1_ref[...], approximate=approximate_gelu)
    # fc2: (tm, H_p) @ (H_p, Dout_p); operands bf16, f32 accumulate.
    y = jnp.dot(h.astype(w2_ref.dtype), w2_ref[...], preferred_element_type=jnp.float32)
    o_ref[...] = (y + b2_ref[...]).astype(o_ref.dtype)


def _mlp_streamed_kernel(x_ref, w1_ref, b1_ref, w2_ref, b2_ref, o_ref, acc_ref, *,
                         approximate_gelu):
    hstep = pl.program_id(1)

    @pl.when(hstep == 0)
    def _():
        acc_ref[...] = jnp.zeros_like(acc_ref)

    # fc1 on this H block: (tm, Din_p) @ (Din_p, th), f32 accumulate.
    h = jnp.dot(x_ref[...], w1_ref[...], preferred_element_type=jnp.float32)
    h = jax.nn.gelu(h + b1_ref[...], approximate=approximate_gelu)

    # fc2 partial: (tm, th) @ (th, Dout_p), accumulated across H blocks.
    acc_ref[...] += jnp.dot(h.astype(w2_ref.dtype), w2_ref[...],
                            preferred_element_type=jnp.float32)

    @pl.when(hstep == pl.num_programs(1) - 1)
    def _():
        o_ref[...] = (acc_ref[...] + b2_ref[...]).astype(o_ref.dtype)


# ----------------------------------------------------------------------------- wrappers


def prepare_mlp_params(params, compute_dtype=jnp.bfloat16):
    """One-time pad (lane-dense multiples of 128) + cast of weights; reuse across calls."""
    w1, b1, w2, b2 = params
    Din, H = w1.shape
    Dout = w2.shape[1]
    Din_p, H_p, Dout_p = (_round_up(d, 128) for d in (Din, H, Dout))
    return dict(
        w1=_pad2(w1, (Din_p, H_p)).astype(compute_dtype),
        b1=_pad2(b1.reshape(1, -1), (1, H_p)).astype(jnp.float32),
        w2=_pad2(w2, (H_p, Dout_p)).astype(compute_dtype),
        b2=_pad2(b2.reshape(1, -1), (1, Dout_p)).astype(jnp.float32),
        dims=(Din, H, Dout),
    )


def mlp_pallas(x2d, prepared, *, tm_max=256, th_max=1024,
               approximate_gelu=True, out_dtype=None, drop=0.0):
    """x2d: (M, Din). Returns (M, Dout)."""
    assert drop == 0.0, "dropout p > 0 not implemented"  # TODO(synk): RNG dropout.

    w1_p, b1_p, w2_p, b2_p = prepared["w1"], prepared["b1"], prepared["w2"], prepared["b2"]
    Din, H, Dout = prepared["dims"]
    Din_p, H_p = w1_p.shape
    Dout_p = w2_p.shape[1]
    compute_dtype = w1_p.dtype
    c_isz = jnp.dtype(compute_dtype).itemsize

    M = x2d.shape[0]
    out_dtype = out_dtype or x2d.dtype
    out_isz = jnp.dtype(out_dtype).itemsize

    # M padded to a 128 multiple (waste < 128 rows); tm divides M_p, >=2 tiles if possible.
    M_p = _round_up(max(M, 1), 128)
    tm = _pick_tile(M_p, tm_max, prefer_multi=True)
    grid_m = M_p // tm

    # Zero padding is exact: padded rows/cols contribute nothing (gelu(0) = 0).
    x_p = _pad2(x2d, (M_p, Din_p)).astype(compute_dtype)

    capacity = _vmem_capacity_bytes()
    budget = int(capacity * 0.6)

    flops = 2 * M_p * H_p * (Din_p + Dout_p)
    transcendentals = M_p * H_p if approximate_gelu else 0

    # Resident-weight footprint (double buffers assumed conservatively; h kept in f32).
    resident_bytes = (2 * tm * Din_p * c_isz
                      + 2 * Din_p * H_p * c_isz
                      + 2 * H_p * Dout_p * c_isz
                      + 2 * (H_p + Dout_p) * 4
                      + 2 * tm * Dout_p * out_isz
                      + tm * H_p * 4)

    if resident_bytes <= budget:
        # ------------------------------------------------ resident-weights path (no H axis)
        vmem_limit = min(int(capacity * 0.9), max(resident_bytes + (8 << 20), 32 << 20))
        cost = pl.CostEstimate(
            flops=flops, transcendentals=transcendentals,
            bytes_accessed=(x_p.size * c_isz + (w1_p.size + w2_p.size) * c_isz
                            + (b1_p.size + b2_p.size) * 4 + M_p * Dout_p * out_isz))
        kernel = functools.partial(_mlp_resident_kernel, approximate_gelu=approximate_gelu)
        y_p = pl.pallas_call(
            kernel,
            out_shape=jax.ShapeDtypeStruct((M_p, Dout_p), out_dtype),
            grid_spec=pltpu.PrefetchScalarGridSpec(
                num_scalar_prefetch=0,
                grid=(grid_m,),
                in_specs=[
                    pl.BlockSpec((tm, Din_p), lambda i: (i, 0)),     # x row tile
                    pl.BlockSpec((Din_p, H_p), lambda i: (0, 0)),    # W1 resident
                    pl.BlockSpec((1, H_p), lambda i: (0, 0)),        # b1 resident
                    pl.BlockSpec((H_p, Dout_p), lambda i: (0, 0)),   # W2 resident
                    pl.BlockSpec((1, Dout_p), lambda i: (0, 0)),     # b2 resident
                ],
                out_specs=pl.BlockSpec((tm, Dout_p), lambda i: (i, 0)),
            ),
            compiler_params=pltpu.CompilerParams(
                dimension_semantics=("parallel",),
                vmem_limit_bytes=vmem_limit),
            cost_estimate=cost,
        )(x_p, w1_p, b1_p, w2_p, b2_p)
    else:
        # ------------------------------------------------ streamed path (H reduction axis)
        k_h = H_p // 128
        th_cands = sorted({128 * d for d in range(1, k_h + 1)
                           if k_h % d == 0 and 128 * d <= max(th_max, 128)}, reverse=True)
        nbuf_w = 3 if grid_m == 1 else 2  # deeper pipelining in the GEMV regime

        def streamed_bytes(th):
            return (2 * tm * Din_p * c_isz
                    + nbuf_w * Din_p * th * c_isz
                    + nbuf_w * th * Dout_p * c_isz
                    + 2 * (th + Dout_p) * 4
                    + 2 * tm * Dout_p * out_isz
                    + tm * Dout_p * 4          # f32 accumulator
                    + tm * th * 4)             # f32 h intermediate

        th = next((t for t in th_cands if streamed_bytes(t) <= budget), th_cands[-1])
        grid_h = H_p // th
        needed = streamed_bytes(th)
        vmem_limit = min(int(capacity * 0.9), max(needed + (8 << 20), 32 << 20))

        cost = pl.CostEstimate(
            flops=flops, transcendentals=transcendentals,
            bytes_accessed=(x_p.size * c_isz
                            + grid_m * (w1_p.size + w2_p.size) * c_isz   # weights re-streamed
                            + grid_m * (b1_p.size + b2_p.size) * 4
                            + M_p * Dout_p * out_isz))
        extra = (grid_m == 1)
        kernel = functools.partial(_mlp_streamed_kernel, approximate_gelu=approximate_gelu)
        y_p = pl.pallas_call(
            kernel,
            out_shape=jax.ShapeDtypeStruct((M_p, Dout_p), out_dtype),
            grid_spec=pltpu.PrefetchScalarGridSpec(
                num_scalar_prefetch=0,
                grid=(grid_m, grid_h),
                in_specs=[
                    pl.BlockSpec((tm, Din_p), lambda i, h: (i, 0)),       # x row tile
                    _weight_spec((Din_p, th), lambda i, h: (0, h), extra),  # W1 H-block
                    pl.BlockSpec((1, th), lambda i, h: (0, h)),           # b1 H-block
                    _weight_spec((th, Dout_p), lambda i, h: (h, 0), extra),  # W2 H-block
                    pl.BlockSpec((1, Dout_p), lambda i, h: (0, 0)),       # b2
                ],
                out_specs=pl.BlockSpec((tm, Dout_p), lambda i, h: (i, 0)),
                scratch_shapes=[pltpu.VMEM((tm, Dout_p), jnp.float32)],
            ),
            compiler_params=pltpu.CompilerParams(
                dimension_semantics=("parallel", "arbitrary"),
                vmem_limit_bytes=vmem_limit),
            cost_estimate=cost,
        )(x_p, w1_p, b1_p, w2_p, b2_p)

    return y_p[:M, :Dout]


def mlp_forward(x, prepared, **kwargs):
    """x: (..., Din). Returns (..., Dout)."""
    Din, H, Dout = prepared["dims"]
    lead = x.shape[:-1]
    x2d = x.reshape(-1, x.shape[-1])
    y2d = mlp_pallas(x2d, prepared, **kwargs)
    return y2d.reshape(*lead, Dout)


def init_params(key, in_features, hidden_features, out_features, dtype=jnp.float32):
    # Deterministic init mimicking nn.Linear (uniform in +/- 1/sqrt(fan_in)).
    k1, k2, k3, k4 = jax.random.split(key, 4)
    lim1 = 1.0 / jnp.sqrt(in_features)
    lim2 = 1.0 / jnp.sqrt(hidden_features)
    # Stored transposed relative to PyTorch: (in, hidden) / (hidden, out).
    w1 = jax.random.uniform(k1, (in_features, hidden_features), dtype, -lim1, lim1)
    b1 = jax.random.uniform(k2, (1, hidden_features), dtype, -lim1, lim1)
    w2 = jax.random.uniform(k3, (hidden_features, out_features), dtype, -lim2, lim2)
    b2 = jax.random.uniform(k4, (1, out_features), dtype, -lim2, lim2)
    return w1, b1, w2, b2


if __name__ == "__main__":
    key = jax.random.PRNGKey(0)
    kx, kp = jax.random.split(key)

    B, N = 2, 8            # batch, sequence length
    in_features = 32
    hidden_features = 64
    out_features = 32

    x = jax.random.normal(kx, (B, N, in_features), dtype=jnp.float32)
    params = init_params(kp, in_features, hidden_features, out_features)
    prepared = prepare_mlp_params(params)   # pad + bf16 cast once, reused per call

    y = mlp_forward(x, prepared)            # default: tanh GELU, drop=0.0
    y = jax.block_until_ready(y)

    # Correctness check against a pure-JAX reference mirroring the kernel numerics
    # (bf16 matmul operands, f32 accumulation, tanh GELU).
    w1, b1, w2, b2 = params
    xb = x.reshape(-1, in_features).astype(jnp.bfloat16).astype(jnp.float32)
    w1b = w1.astype(jnp.bfloat16).astype(jnp.float32)
    w2b = w2.astype(jnp.bfloat16).astype(jnp.float32)
    h_ref = jax.nn.gelu(xb @ w1b + b1.astype(jnp.float32), approximate=True)
    h_ref = h_ref.astype(jnp.bfloat16).astype(jnp.float32)
    y_ref = (h_ref @ w2b + b2.astype(jnp.float32)).reshape(B, N, out_features)
    assert jnp.allclose(y.astype(jnp.float32), y_ref, atol=2e-3, rtol=2e-3), \
        "mismatch vs reference"

    print("KERNEL_OK")
</pallas_src>

<mosaic_0001>
module attributes {stable_mosaic.version = 11 : i64} {
  func.func @_mlp_resident_kernel(%arg0: i32, %arg1: memref<128x128xbf16, #tpu.memory_space<vmem>>, %arg2: memref<128x128xbf16, #tpu.memory_space<vmem>>, %arg3: memref<1x128xf32, #tpu.memory_space<vmem>>, %arg4: memref<128x128xbf16, #tpu.memory_space<vmem>>, %arg5: memref<1x128xf32, #tpu.memory_space<vmem>>, %arg6: memref<128x128xf32, #tpu.memory_space<vmem>>) attributes {dimension_semantics = [#tpu.dimension_semantics<parallel>], iteration_bounds = array<i64: 1>, scalar_prefetch = 0 : i64, scratch_operands = 0 : i64, tpu.core_type = #tpu.core_type<tc>, window_params = [{transform_indices = @transform_0, window_bounds = array<i64: 128, 128>}, {pipeline_mode = #tpu.pipeline_mode<synchronous>, transform_indices = @transform_1, window_bounds = array<i64: 128, 128>}, {pipeline_mode = #tpu.pipeline_mode<synchronous>, transform_indices = @transform_2, window_bounds = array<i64: 1, 128>}, {pipeline_mode = #tpu.pipeline_mode<synchronous>, transform_indices = @transform_3, window_bounds = array<i64: 128, 128>}, {pipeline_mode = #tpu.pipeline_mode<synchronous>, transform_indices = @transform_4, window_bounds = array<i64: 1, 128>}, {transform_indices = @transform_5, window_bounds = array<i64: 128, 128>}]} {
    %c0 = arith.constant 0 : index
    %c0_0 = arith.constant 0 : index
    %0 = vector.load %arg1[%c0, %c0_0] : memref<128x128xbf16, #tpu.memory_space<vmem>>, vector<128x128xbf16>
    %c0_1 = arith.constant 0 : index
    %c0_2 = arith.constant 0 : index
    %1 = vector.load %arg2[%c0_1, %c0_2] : memref<128x128xbf16, #tpu.memory_space<vmem>>, vector<128x128xbf16>
    %cst = arith.constant dense<0.000000e+00> : vector<128x128xf32>
    %2 = tpu.matmul %0, %1, %cst {dimension_numbers = #tpu.dot_dimension_numbers<[1], [0], [0], [1], [0, 0, 1, 1], [], []>} : vector<128x128xbf16>, vector<128x128xbf16>, vector<128x128xf32> -> vector<128x128xf32>
    %c0_3 = arith.constant 0 : index
    %c0_4 = arith.constant 0 : index
    %3 = vector.load %arg3[%c0_3, %c0_4] : memref<1x128xf32, #tpu.memory_space<vmem>>, vector<1x128xf32>
    %4 = vector.broadcast %3 : vector<1x128xf32> to vector<128x128xf32>
    %5 = arith.addf %2, %4 : vector<128x128xf32>
    %6 = arith.mulf %5, %5 : vector<128x128xf32>
    %7 = arith.mulf %5, %6 : vector<128x128xf32>
    %cst_5 = arith.constant 4.471500e-02 : f32
    %8 = vector.broadcast %cst_5 : f32 to vector<128x128xf32>
    %9 = arith.mulf %8, %7 : vector<128x128xf32>
    %10 = arith.addf %5, %9 : vector<128x128xf32>
    %cst_6 = arith.constant 0.797884583 : f32
    %11 = vector.broadcast %cst_6 : f32 to vector<128x128xf32>
    %12 = arith.mulf %11, %10 : vector<128x128xf32>
    %13 = math.tanh %12 : vector<128x128xf32>
    %cst_7 = arith.constant 1.000000e+00 : f32
    %14 = vector.broadcast %cst_7 : f32 to vector<128x128xf32>
    %15 = arith.addf %14, %13 : vector<128x128xf32>
    %cst_8 = arith.constant 5.000000e-01 : f32
    %16 = vector.broadcast %cst_8 : f32 to vector<128x128xf32>
    %17 = arith.mulf %16, %15 : vector<128x128xf32>
    %18 = arith.mulf %5, %17 : vector<128x128xf32>
    %19 = arith.truncf %18 : vector<128x128xf32> to vector<128x128xbf16>
    %c0_9 = arith.constant 0 : index
    %c0_10 = arith.constant 0 : index
    %20 = vector.load %arg4[%c0_9, %c0_10] : memref<128x128xbf16, #tpu.memory_space<vmem>>, vector<128x128xbf16>
    %cst_11 = arith.constant dense<0.000000e+00> : vector<128x128xf32>
    %21 = tpu.matmul %19, %20, %cst_11 {dimension_numbers = #tpu.dot_dimension_numbers<[1], [0], [0], [1], [0, 0, 1, 1], [], []>} : vector<128x128xbf16>, vector<128x128xbf16>, vector<128x128xf32> -> vector<128x128xf32>
    %c0_12 = arith.constant 0 : index
    %c0_13 = arith.constant 0 : index
    %22 = vector.load %arg5[%c0_12, %c0_13] : memref<1x128xf32, #tpu.memory_space<vmem>>, vector<1x128xf32>
    %23 = vector.broadcast %22 : vector<1x128xf32> to vector<128x128xf32>
    %24 = arith.addf %21, %23 : vector<128x128xf32>
    %c0_14 = arith.constant 0 : index
    %c0_15 = arith.constant 0 : index
    %25 = vector.load %arg6[%c0_14, %c0_15] : memref<128x128xf32, #tpu.memory_space<vmem>>, vector<128x128xf32>
    tpu.vector_store %arg6[%c0_14, %c0_15], %24 {strides = array<i32>} : memref<128x128xf32, #tpu.memory_space<vmem>>, vector<128x128xf32>,
    return
  }
  func.func @transform_0(%arg0: i32) -> (i32, i32) {
    %c0_i32 = arith.constant 0 : i32
    %c0_i32_0 = arith.constant 0 : i32
    return %arg0, %c0_i32 : i32, i32
  }
  func.func @transform_1(%arg0: i32) -> (i32, i32) {
    %c0_i32 = arith.constant 0 : i32
    %c0_i32_0 = arith.constant 0 : i32
    %c0_i32_1 = arith.constant 0 : i32
    return %c0_i32, %c0_i32_0 : i32, i32
  }
  func.func @transform_2(%arg0: i32) -> (i32, i32) {
    %c0_i32 = arith.constant 0 : i32
    %c0_i32_0 = arith.constant 0 : i32
    %c0_i32_1 = arith.constant 0 : i32
    return %c0_i32, %c0_i32_0 : i32, i32
  }
  func.func @transform_3(%arg0: i32) -> (i32, i32) {
    %c0_i32 = arith.constant 0 : i32
    %c0_i32_0 = arith.constant 0 : i32
    %c0_i32_1 = arith.constant 0 : i32
    return %c0_i32, %c0_i32_0 : i32, i32
  }
  func.func @transform_4(%arg0: i32) -> (i32, i32) {
    %c0_i32 = arith.constant 0 : i32
    %c0_i32_0 = arith.constant 0 : i32
    %c0_i32_1 = arith.constant 0 : i32
    return %c0_i32, %c0_i32_0 : i32, i32
  }
  func.func @transform_5(%arg0: i32) -> (i32, i32) {
    %c0_i32 = arith.constant 0 : i32
    %c0_i32_0 = arith.constant 0 : i32
    return %arg0, %c0_i32 : i32, i32
  }
}

</mosaic_0001>

<bundles_post_ra>
// kernel: tpu_custom_call.1
= control target key start
LH: loop header
LB: loop body
LE: loop exit
PB: predicated region body
PF: predicated region fallthrough
CT: control target
= control target key end

     0   :  { %10 = vsyncpa [#allocation3], 0  ;;  %s999_s0 = inlined_call_operand.hbm [shape: bf16[128,128], index: 0, kind: input, shape index: {}]   ;;  %s1000_s1 = inlined_call_operand.hbm [shape: bf16[128,128], index: 1, kind: input, shape index: {}]   ;;  %s1001_s2 = inlined_call_operand.vmem [shape: f32[1,128], index: 2, kind: input, shape index: {}]   ;;  %s1002_s3 = inlined_call_operand.hbm [shape: bf16[128,128], index: 3, kind: input, shape index: {}]   ;;  %s1003_s4 = inlined_call_operand.vmem [shape: f32[1,128], index: 4, kind: input, shape index: {}]   ;;  %s1004_s5 = inlined_call_operand.hbm [shape: f32[128,128], index: 5, kind: output, shape index: {}]  }
   0x1   :  { %11 = vsyncpa [#allocation6], 0 }
   0x2   :  { %12 = vsyncpa [#allocation4], 0  ;;  %s30_s20 = sshll.u32 %s1000_s1, 4  ;;  %s834_s21 = smov [#allocation5]   ;;  %s31_s20 = int_to_ptr.hbm [resolvable:$true] %s30_s20 }
   0x3   :  { %s32_s22 = sshll.u32 %s834_s21, 4  ;;  %s17_s25 = sshll.u32 %s999_s0, 4  ;;  %s33_s22 = int_to_ptr.vmem [resolvable:$true] %s32_s22  ;;  %s18_s25 = int_to_ptr.hbm [resolvable:$true] %s17_s25 }
   0x4   :  { %s835_s26 = smov 64   ;;  %s836_s27 = smov 4  }
   0x5   :  { %38 = dma.hbm_to_vmem [thread:$0]  %s31_s20, 1024, %s33_s22, [#allocation6], %s835_s26, %s835_s26, %s836_s27  }
   0x6   :  { %s837_s28 = smov [#allocation2]   ;;  %s45_s7 = sshll.u32 %s1002_s3, 4  ;;  %s46_s7 = int_to_ptr.hbm [resolvable:$true] %s45_s7 }
   0x7   :  { %s19_s29 = sshll.u32 %s837_s28, 4  ;;  %s838_s1 = smov [#allocation7]   ;;  %s20_s29 = int_to_ptr.vmem [resolvable:$true] %s19_s29 }
   0x8   :  { %25 = dma.hbm_to_vmem [thread:$0]  %s18_s25, 1024, %s20_s29, [#allocation3], %s835_s26, %s835_s26, %s836_s27  }
   0x9   :  { %s47_s8 = sshll.u32 %s838_s1, 4  ;;  %s48_s8 = int_to_ptr.vmem [resolvable:$true] %s47_s8 }
   0xa   :  { %53 = dma.hbm_to_vmem [thread:$0]  %s46_s7, 1024, %s48_s8, [#allocation6], %s835_s26, %s835_s26, %s836_s27  }
   0xb   :  { %828 = dma.done.wait [#allocation3], 1024  }
   0xc   :  { %829 = vsyncadd [#allocation3], 4294966272 }
   0xd   :  { %830 = dma.done.wait [#allocation6], 2048  }
   0xe   :  { %831 = vsyncadd [#allocation6], 4294965248  ;;  %v665_v0 = vld [vmem:[#allocation5 + $0x38] sm:$0xff]  ;;  %v664_v1 = vld [vmem:[#allocation5 + $0x30] sm:$0xff]  ;;  %s540_s13 = sshll.u32 %s1004_s5, 4  ;;  %s840_s14 = smov 128   ;;  %s541_s13 = int_to_ptr.hbm [resolvable:$true] %s540_s13 }
   0xf   :  { %200 = vmatpush.bf16.msra.mxu0 %v665_v0  ;;  %674 = vmatpush.bf16.msra.mxu2 %v665_v0  ;;  %v663_v2 = vld [vmem:[#allocation5 + $0x28] sm:$0xff]  ;;  %v662_v3 = vld [vmem:[#allocation5 + $0x20] sm:$0xff]  ;;  %v661_v4 = vld [vmem:[#allocation5 + $0x18] sm:$0xff]  ;;  %s841_s15 = smov 8  }
  0x10   :  { %v660_v5 = vld [vmem:[#allocation5 + $0x10] sm:$0xff]  ;;  %v659_v6 = vld [vmem:[#allocation5 + $0x8] sm:$0xff]  ;;  %v658_v7 = vld [vmem:[#allocation5] sm:$0xff] }
  0x11   :  { %v650_v8 = vld [vmem:[#allocation2] sm:$0xff]  ;;  %v651_v10 = vld [vmem:[#allocation2 + $0x8] sm:$0xff]  ;;  %v652_v12 = vld [vmem:[#allocation2 + $0x10] sm:$0xff] }
  0x12   :  { %v654_v9 = vld [vmem:[#allocation2 + $0x20] sm:$0xff]  ;;  %v655_v11 = vld [vmem:[#allocation2 + $0x28] sm:$0xff]  ;;  %v656_v13 = vld [vmem:[#allocation2 + $0x30] sm:$0xff] }
  0x13   :  { %201 = vmatpush.bf16.msra.mxu0 %v664_v1  ;;  %675 = vmatpush.bf16.msra.mxu2 %v664_v1  ;;  %v653_v14 = vld [vmem:[#allocation2 + $0x18] sm:$0xff]  ;;  %v672_v17 = vld [vmem:[#allocation7 + $0x30] sm:$0xff]  ;;  %v671_v18 = vld [vmem:[#allocation7 + $0x28] sm:$0xff] }
  0x14   :  { %v657_v15 = vld [vmem:[#allocation2 + $0x38] sm:$0xff]  ;;  %v670_v19 = vld [vmem:[#allocation7 + $0x20] sm:$0xff]  ;;  %v668_v21 = vld [vmem:[#allocation7 + $0x10] sm:$0xff] }
  0x15   :  { %v673_v16 = vld [vmem:[#allocation7 + $0x38] sm:$0xff]  ;;  %v667_v22 = vld [vmem:[#allocation7 + $0x8] sm:$0xff]  ;;  %v884_v23 = vld [vmem:[%s1001_s2] ss:$0 sm:$0xff] }
  0x16   :  { %469 = vmatpush.bf16.msra.mxu1 %v673_v16  ;;  %682 = vmatpush.bf16.msra.mxu3 %v673_v16  ;;  %v669_v20 = vld [vmem:[#allocation7 + $0x18] sm:$0xff]  ;;  %v666_v24 = vld [vmem:[#allocation7] sm:$0xff] }
  0x17   :  { %202 = vmatpush.bf16.msra.mxu0 %v663_v2  ;;  %676 = vmatpush.bf16.msra.mxu2 %v663_v2 }
  0x1a   :  { %470 = vmatpush.bf16.msra.mxu1 %v672_v17  ;;  %683 = vmatpush.bf16.msra.mxu3 %v672_v17 }
  0x1b   :  { %203 = vmatpush.bf16.msra.mxu0 %v662_v3  ;;  %677 = vmatpush.bf16.msra.mxu2 %v662_v3 }
  0x1e   :  { %471 = vmatpush.bf16.msra.mxu1 %v671_v18  ;;  %684 = vmatpush.bf16.msra.mxu3 %v671_v18 }
  0x1f   :  { %204 = vmatpush.bf16.msra.mxu0 %v661_v4  ;;  %678 = vmatpush.bf16.msra.mxu2 %v661_v4 }
  0x22   :  { %472 = vmatpush.bf16.msra.mxu1 %v670_v19  ;;  %685 = vmatpush.bf16.msra.mxu3 %v670_v19 }
  0x23   :  { %205 = vmatpush.bf16.msra.mxu0 %v660_v5  ;;  %679 = vmatpush.bf16.msra.mxu2 %v660_v5 }
  0x26   :  { %473 = vmatpush.bf16.msra.mxu1 %v669_v20  ;;  %686 = vmatpush.bf16.msra.mxu3 %v669_v20 }
  0x27   :  { %206 = vmatpush.bf16.msra.mxu0 %v659_v6  ;;  %680 = vmatpush.bf16.msra.mxu2 %v659_v6 }
  0x2a   :  { %474 = vmatpush.bf16.msra.mxu1 %v668_v21  ;;  %687 = vmatpush.bf16.msra.mxu3 %v668_v21 }
  0x2b   :  { %207 = vmatpush.bf16.msra.mxu0 %v658_v7  ;;  %681 = vmatpush.bf16.msra.mxu2 %v658_v7 }
  0x2e   :  { %208 = vmatmul.bf16.vlgmr.msra.gmra.mxu0 %v650_v8  ;;  %228 = vmatmul.bf16.vlgmr.msra.gmra.mxu2 %v654_v9 }
  0x2f   :  { %475 = vmatpush.bf16.msra.mxu1 %v667_v22  ;;  %688 = vmatpush.bf16.msra.mxu3 %v667_v22 }
  0x33   :  { %476 = vmatpush.bf16.msra.mxu1 %v666_v24  ;;  %689 = vmatpush.bf16.msra.mxu3 %v666_v24 }
  0x3e   :  { %213 = vmatmul.bf16.gmra.mxu0 %v651_v10  ;;  %233 = vmatmul.bf16.gmra.mxu2 %v655_v11 }
  0x4e   :  { %218 = vmatmul.bf16.gmra.mxu0 %v652_v12  ;;  %238 = vmatmul.bf16.gmra.mxu2 %v656_v13 }
  0x5e   :  { %223 = vmatmul.bf16.gmra.mxu0 %v653_v14  ;;  %243 = vmatmul.bf16.gmra.mxu2 %v657_v15 }
  0xab   :  { %v209_v25 = vpop.f32.mrf.mxu0 }
  0xac   :  { %v887_v26 = vadd.f32 %v884_v23, %v209_v25 }
  0xae   :  { %v249_v27 = vmul.f32 %v887_v26, %v887_v26 }
  0xb0   :  { %v265_v28 = vmul.f32 %v249_v27, %v887_v26 }
  0xb1   :  { %v229_v29 = vpop.f32.mrf.mxu2 }
  0xb2   :  { %v281_v30 = vmul.f32 0.044715, %v265_v28  ;;  %v893_v31 = vadd.f32 %v884_v23, %v229_v29 }
  0xb3   :  { %v211_v32 = vpop.f32.mrf.mxu0 }
  0xb4   :  { %v297_v33 = vadd.f32 %v281_v30, %v887_v26  ;;  %v257_v34 = vmul.f32 %v893_v31, %v893_v31  ;;  %v212_v35 = vadd.f32 %v884_v23, %v211_v32 }
  0xb6   :  { %v273_v36 = vmul.f32 %v257_v34, %v893_v31  ;;  %v250_v37 = vmul.f32 %v212_v35, %v212_v35  ;;  %v313_v38 = vmul.f32 0.7978846, %v297_v33 }
  0xb8   :  { %v289_v39 = vmul.f32 0.044715, %v273_v36  ;;  %v266_v40 = vmul.f32 %v250_v37, %v212_v35  ;;  %700 = vtanh.f32 %v313_v38 }
  0xb9   :  { %v231_v41 = vpop.f32.mrf.mxu2 }
  0xba   :  { %v305_v42 = vadd.f32 %v289_v39, %v893_v31  ;;  %v282_v43 = vmul.f32 0.044715, %v266_v40  ;;  %v902_v44 = vadd.f32 %v884_v23, %v231_v41 }
  0xbb   :  { %v214_v45 = vpop.f32.mrf.mxu0 }
  0xbc   :  { %v298_v46 = vadd.f32 %v282_v43, %v212_v35  ;;  %v258_v47 = vmul.f32 %v902_v44, %v902_v44  ;;  %v907_v48 = vadd.f32 %v884_v23, %v214_v45  ;;  %v321_v49 = vmul.f32 0.7978846, %v305_v42 }
  0xbe   :  { %v274_v50 = vmul.f32 %v258_v47, %v902_v44  ;;  %v251_v51 = vmul.f32 %v907_v48, %v907_v48  ;;  %v314_v52 = vmul.f32 0.7978846, %v298_v46  ;;  %702 = vtanh.f32 %v321_v49  ;;  %v701_v53 = vpop.eup %700 }
  0xbf   :  { %v345_v61 = vadd.f32 1.0, %v701_v53 }
  0xc0   :  { %v290_v54 = vmul.f32 0.044715, %v274_v50  ;;  %v267_v55 = vmul.f32 %v251_v51, %v907_v48  ;;  %704 = vtanh.f32 %v314_v52 }
  0xc1   :  { %v234_v56 = vpop.f32.mrf.mxu2  ;;  %v361_v8 = vmul.f32 0.5, %v345_v61 }
  0xc2   :  { %v306_v57 = vadd.f32 %v290_v54, %v902_v44  ;;  %v283_v58 = vmul.f32 0.044715, %v267_v55  ;;  %v915_v59 = vadd.f32 %v884_v23, %v234_v56 }
  0xc3   :  { %v216_v60 = vpop.f32.mrf.mxu0  ;;  %v377_v18 = vmul.f32 %v361_v8, %v887_v26 }
  0xc4   :  { %v299_v62 = vadd.f32 %v283_v58, %v907_v48  ;;  %v259_v63 = vmul.f32 %v915_v59, %v915_v59  ;;  %v921_v0 = vadd.f32 %v884_v23, %v216_v60  ;;  %v322_v1 = vmul.f32 0.7978846, %v306_v57  ;;  %v703_v2 = vpop.eup %702 }
  0xc5   :  { %v353_v13 = vadd.f32 1.0, %v703_v2 }
  0xc6   :  { %v705_v3 = vpop.eup %704  ;;  %v275_v4 = vmul.f32 %v259_v63, %v915_v59  ;;  %v252_v5 = vmul.f32 %v921_v0, %v921_v0  ;;  %706 = vtanh.f32 %v322_v1  ;;  %v315_v6 = vmul.f32 0.7978846, %v299_v62 }
  0xc7   :  { %v346_v7 = vadd.f32 1.0, %v705_v3  ;;  %v369_v29 = vmul.f32 0.5, %v353_v13 }
  0xc8   :  { %v291_v9 = vmul.f32 0.044715, %v275_v4  ;;  %v268_v10 = vmul.f32 %v252_v5, %v921_v0  ;;  %708 = vtanh.f32 %v315_v6 }
  0xc9   :  { %v236_v11 = vpop.f32.mrf.mxu2  ;;  %v362_v12 = vmul.f32 0.5, %v346_v7  ;;  %v385_v38 = vmul.f32 %v369_v29, %v893_v31 }
  0xca   :  { %v307_v14 = vadd.f32 %v291_v9, %v915_v59  ;;  %v284_v15 = vmul.f32 0.044715, %v268_v10  ;;  %v929_v16 = vadd.f32 %v884_v23, %v236_v11 }
  0xcb   :  { %v219_v17 = vpop.f32.mrf.mxu0  ;;  %v378_v19 = vmul.f32 %v362_v12, %v212_v35 }
  0xcc   :  { %v707_v20 = vpop.eup %706  ;;  %v300_v21 = vadd.f32 %v284_v15, %v921_v0  ;;  %v260_v22 = vmul.f32 %v929_v16, %v929_v16  ;;  %v936_v24 = vadd.f32 %v884_v23, %v219_v17  ;;  %v323_v25 = vmul.f32 0.7978846, %v307_v14 }
  0xcd   :  { %v393_v27 = vpack.c.bf16 %v378_v19, %v377_v18  ;;  %v354_v28 = vadd.f32 1.0, %v707_v20 }
  0xce   :  { %v276_v30 = vmul.f32 %v260_v22, %v929_v16  ;;  %v253_v32 = vmul.f32 %v936_v24, %v936_v24  ;;  %v316_v26 = vmul.f32 0.7978846, %v300_v21  ;;  %710 = vtanh.f32 %v323_v25  ;;  %v709_v34 = vpop.eup %708 }
  0xcf   :  { %477 = vmatmul.bf16.vlgmr.msra.gmra.mxu1 %v393_v27  ;;  %v370_v33 = vmul.f32 0.5, %v354_v28  ;;  %v347_v46 = vadd.f32 1.0, %v709_v34 }
  0xd0   :  { %v292_v35 = vmul.f32 0.044715, %v276_v30  ;;  %v269_v36 = vmul.f32 %v253_v32, %v936_v24  ;;  %712 = vtanh.f32 %v316_v26 }
  0xd1   :  { %v239_v37 = vpop.f32.mrf.mxu2  ;;  %v386_v39 = vmul.f32 %v370_v33, %v902_v44  ;;  %v363_v56 = vmul.f32 0.5, %v347_v46 }
  0xd2   :  { %v308_v40 = vadd.f32 %v292_v35, %v929_v16  ;;  %v285_v41 = vmul.f32 0.044715, %v269_v36  ;;  %v946_v42 = vadd.f32 %v884_v23, %v239_v37 }
  0xd3   :  { %v221_v43 = vpop.f32.mrf.mxu0  ;;  %v397_v45 = vpack.c.bf16 %v386_v39, %v385_v38  ;;  %v379_v4 = vmul.f32 %v363_v56, %v907_v48 }
  0xd4   :  { %v301_v47 = vadd.f32 %v285_v41, %v936_v24  ;;  %v261_v49 = vmul.f32 %v946_v42, %v946_v42  ;;  %v952_v50 = vadd.f32 %v884_v23, %v221_v43  ;;  %v324_v31 = vmul.f32 0.7978846, %v308_v40  ;;  %v711_v51 = vpop.eup %710 }
  0xd5   :  { %497 = vmatmul.bf16.vlgmr.msra.gmra.mxu3 %v397_v45  ;;  %v355_v62 = vadd.f32 1.0, %v711_v51 }
  0xd6   :  { %v713_v44 = vpop.eup %712  ;;  %v277_v52 = vmul.f32 %v261_v49, %v946_v42  ;;  %v254_v53 = vmul.f32 %v952_v50, %v952_v50  ;;  %714 = vtanh.f32 %v324_v31  ;;  %v317_v54 = vmul.f32 0.7978846, %v301_v47 }
  0xd7   :  { %v348_v55 = vadd.f32 1.0, %v713_v44  ;;  %v371_v13 = vmul.f32 0.5, %v355_v62 }
  0xd8   :  { %v293_v57 = vmul.f32 0.044715, %v277_v52  ;;  %v270_v58 = vmul.f32 %v254_v53, %v952_v50  ;;  %716 = vtanh.f32 %v317_v54 }
  0xd9   :  { %v241_v60 = vpop.f32.mrf.mxu2  ;;  %v364_v61 = vmul.f32 0.5, %v348_v55  ;;  %v387_v21 = vmul.f32 %v371_v13, %v915_v59 }
  0xda   :  { %v309_v63 = vadd.f32 %v293_v57, %v946_v42  ;;  %v286_v1 = vmul.f32 0.044715, %v270_v58  ;;  %v960_v2 = vadd.f32 %v884_v23, %v241_v60 }
  0xdb   :  { %v224_v3 = vpop.f32.mrf.mxu0  ;;  %v380_v5 = vmul.f32 %v364_v61, %v921_v0 }
  0xdc   :  { %v715_v6 = vpop.eup %714  ;;  %v302_v7 = vadd.f32 %v286_v1, %v952_v50  ;;  %v262_v8 = vmul.f32 %v960_v2, %v960_v2  ;;  %v968_v9 = vadd.f32 %v884_v23, %v224_v3  ;;  %v325_v10 = vmul.f32 0.7978846, %v309_v63 }
  0xdd   :  { %v394_v11 = vpack.c.bf16 %v380_v5, %v379_v4  ;;  %v356_v12 = vadd.f32 1.0, %v715_v6 }
  0xde   :  { %v278_v14 = vmul.f32 %v262_v8, %v960_v2  ;;  %v255_v48 = vmul.f32 %v968_v9, %v968_v9  ;;  %v318_v15 = vmul.f32 0.7978846, %v302_v7  ;;  %718 = vtanh.f32 %v325_v10  ;;  %v717_v17 = vpop.eup %716 }
  0xdf   :  { %482 = vmatmul.bf16.gmra.mxu1 %v394_v11  ;;  %v372_v0 = vmul.f32 0.5, %v356_v12  ;;  %v349_v32 = vadd.f32 1.0, %v717_v17 }
  0xe0   :  { %v294_v18 = vmul.f32 0.044715, %v278_v14  ;;  %v271_v19 = vmul.f32 %v255_v48, %v968_v9  ;;  %720 = vtanh.f32 %v318_v15 }
  0xe1   :  { %v244_v20 = vpop.f32.mrf.mxu2  ;;  %v388_v22 = vmul.f32 %v372_v0, %v929_v16  ;;  %v365_v40 = vmul.f32 0.5, %v349_v32 }
  0xe2   :  { %v310_v25 = vadd.f32 %v294_v18, %v960_v2  ;;  %v287_v27 = vmul.f32 0.044715, %v271_v19  ;;  %v978_v28 = vadd.f32 %v884_v23, %v244_v20 }
  0xe3   :  { %v226_v29 = vpop.f32.mrf.mxu0  ;;  %v398_v30 = vpack.c.bf16 %v388_v22, %v387_v21  ;;  %v381_v44 = vmul.f32 %v365_v40, %v936_v24  ;;  %v699_v21 = vld [vmem:[%s1003_s4] ss:$0 sm:$0xff]  ;;  %s839_s4 = smov [#allocation8]  }
  0xe4   :  { %v303_v26 = vadd.f32 %v287_v27, %v968_v9  ;;  %v263_v33 = vmul.f32 %v978_v28, %v978_v28  ;;  %v227_v34 = vadd.f32 %v884_v23, %v226_v29  ;;  %v326_v35 = vmul.f32 0.7978846, %v310_v25  ;;  %v719_v59 = vpop.eup %718  ;;  %s538_s10 = sshll.u32 %s839_s4, 4  ;;  %s539_s10 = int_to_ptr.vmem [resolvable:$true] %s538_s10 }
  0xe5   :  { %502 = vmatmul.bf16.gmra.mxu3 %v398_v30  ;;  %v357_v47 = vadd.f32 1.0, %v719_v59 }
  0xe6   :  { %v721_v16 = vpop.eup %720  ;;  %v279_v36 = vmul.f32 %v263_v33, %v978_v28  ;;  %v256_v37 = vmul.f32 %v227_v34, %v227_v34  ;;  %722 = vtanh.f32 %v326_v35  ;;  %v319_v38 = vmul.f32 0.7978846, %v303_v26 }
  0xe7   :  { %v350_v39 = vadd.f32 1.0, %v721_v16  ;;  %v373_v60 = vmul.f32 0.5, %v357_v47 }
  0xe8   :  { %v295_v41 = vmul.f32 0.044715, %v279_v36  ;;  %v272_v43 = vmul.f32 %v256_v37, %v227_v34  ;;  %724 = vtanh.f32 %v319_v38 }
  0xe9   :  { %v246_v45 = vpop.f32.mrf.mxu2  ;;  %v366_v46 = vmul.f32 0.5, %v350_v39 }
  0xea   :  { %v311_v49 = vadd.f32 %v295_v41, %v978_v28  ;;  %v288_v31 = vmul.f32 0.044715, %v272_v43  ;;  %v247_v51 = vadd.f32 %v884_v23, %v246_v45  ;;  %v389_v23 = vmul.f32 %v373_v60, %v946_v42 }
  0xeb   :  { %v382_v52 = vmul.f32 %v366_v46, %v952_v50 }
  0xec   :  { %v723_v53 = vpop.eup %722  ;;  %v304_v54 = vadd.f32 %v288_v31, %v227_v34  ;;  %v264_v55 = vmul.f32 %v247_v51, %v247_v51  ;;  %v327_v56 = vmul.f32 0.7978846, %v311_v49 }
  0xed   :  { %v395_v57 = vpack.c.bf16 %v382_v52, %v381_v44  ;;  %v358_v58 = vadd.f32 1.0, %v723_v53 }
  0xee   :  { %v280_v61 = vmul.f32 %v264_v55, %v247_v51  ;;  %v320_v62 = vmul.f32 0.7978846, %v304_v54  ;;  %726 = vtanh.f32 %v327_v56  ;;  %v725_v1 = vpop.eup %724 }
  0xef   :  { %487 = vmatmul.bf16.gmra.mxu1 %v395_v57  ;;  %v374_v63 = vmul.f32 0.5, %v358_v58  ;;  %v351_v5 = vadd.f32 1.0, %v725_v1 }
  0xf0   :  { %v296_v3 = vmul.f32 0.044715, %v280_v61  ;;  %728 = vtanh.f32 %v320_v62 }
  0xf1   :  { %v390_v24 = vmul.f32 %v374_v63, %v960_v2  ;;  %v367_v11 = vmul.f32 0.5, %v351_v5 }
  0xf2   :  { %v312_v50 = vadd.f32 %v296_v3, %v247_v51 }
  0xf3   :  { %v399_v4 = vpack.c.bf16 %v390_v24, %v389_v23  ;;  %v383_v14 = vmul.f32 %v367_v11, %v968_v9 }
  0xf4   :  { %v328_v6 = vmul.f32 0.7978846, %v312_v50  ;;  %v727_v7 = vpop.eup %726 }
  0xf5   :  { %507 = vmatmul.bf16.gmra.mxu3 %v399_v4  ;;  %v359_v13 = vadd.f32 1.0, %v727_v7 }
  0xf6   :  { %v729_v8 = vpop.eup %728  ;;  %730 = vtanh.f32 %v328_v6 }
  0xf7   :  { %v352_v10 = vadd.f32 1.0, %v729_v8  ;;  %v375_v17 = vmul.f32 0.5, %v359_v13 }
  0xf9   :  { %v368_v12 = vmul.f32 0.5, %v352_v10  ;;  %v391_v18 = vmul.f32 %v375_v17, %v978_v28 }
  0xfb   :  { %v384_v48 = vmul.f32 %v368_v12, %v227_v34 }
  0xfc   :  { %v731_v15 = vpop.eup %730 }
  0xfd   :  { %v396_v0 = vpack.c.bf16 %v384_v48, %v383_v14  ;;  %v360_v42 = vadd.f32 1.0, %v731_v15 }
  0xff   :  { %492 = vmatmul.bf16.gmra.mxu1 %v396_v0  ;;  %v376_v2 = vmul.f32 0.5, %v360_v42 }
 0x101   :  { %v392_v19 = vmul.f32 %v376_v2, %v247_v51 }
 0x103   :  { %v400_v20 = vpack.c.bf16 %v392_v19, %v391_v18 }
 0x105   :  { %512 = vmatmul.bf16.gmra.mxu3 %v400_v20 }
 0x14c   :  { %v478_v22 = vpop.f32.mrf.mxu1 }
 0x14d   :  { %v479_v25 = vadd.f32 %v699_v21, %v478_v22 }
 0x14f   :  { %518 = vst [vmem:[#allocation8] sm:$0xff] %v479_v25 }
 0x154   :  { %v480_v9 = vpop.f32.mrf.mxu1 }
 0x155   :  { %v481_v27 = vadd.f32 %v699_v21, %v480_v9 }
 0x157   :  { %519 = vst [vmem:[#allocation8 + $0x8] sm:$0xff] %v481_v27 }
 0x158   :  { %v498_v29 = vpop.f32.mrf.mxu3 }
 0x159   :  { %v499_v30 = vadd.f32 %v699_v21, %v498_v29 }
 0x15b   :  { %526 = vst [vmem:[#allocation8 + $0x40] sm:$0xff] %v499_v30 }
 0x15c   :  { %v483_v32 = vpop.f32.mrf.mxu1 }
 0x15d   :  { %v484_v26 = vadd.f32 %v699_v21, %v483_v32 }
 0x15f   :  { %520 = vst [vmem:[#allocation8 + $0x10] sm:$0xff] %v484_v26 }
 0x160   :  { %v500_v28 = vpop.f32.mrf.mxu3 }
 0x161   :  { %v501_v33 = vadd.f32 %v699_v21, %v500_v28 }
 0x163   :  { %527 = vst [vmem:[#allocation8 + $0x48] sm:$0xff] %v501_v33 }
 0x164   :  { %v485_v34 = vpop.f32.mrf.mxu1 }
 0x165   :  { %v486_v35 = vadd.f32 %v699_v21, %v485_v34 }
 0x167   :  { %521 = vst [vmem:[#allocation8 + $0x18] sm:$0xff] %v486_v35 }
 0x168   :  { %v503_v59 = vpop.f32.mrf.mxu3 }
 0x169   :  { %v504_v16 = vadd.f32 %v699_v21, %v503_v59 }
 0x16b   :  { %528 = vst [vmem:[#allocation8 + $0x50] sm:$0xff] %v504_v16 }
 0x16c   :  { %v488_v36 = vpop.f32.mrf.mxu1 }
 0x16d   :  { %v489_v37 = vadd.f32 %v699_v21, %v488_v36 }
 0x16f   :  { %522 = vst [vmem:[#allocation8 + $0x20] sm:$0xff] %v489_v37 }
 0x170   :  { %v505_v38 = vpop.f32.mrf.mxu3 }
 0x171   :  { %v506_v39 = vadd.f32 %v699_v21, %v505_v38 }
 0x173   :  { %529 = vst [vmem:[#allocation8 + $0x58] sm:$0xff] %v506_v39 }
 0x174   :  { %v490_v40 = vpop.f32.mrf.mxu1 }
 0x175   :  { %v491_v41 = vadd.f32 %v699_v21, %v490_v40 }
 0x177   :  { %523 = vst [vmem:[#allocation8 + $0x28] sm:$0xff] %v491_v41 }
 0x178   :  { %v508_v43 = vpop.f32.mrf.mxu3 }
 0x179   :  { %v509_v45 = vadd.f32 %v699_v21, %v508_v43 }
 0x17b   :  { %530 = vst [vmem:[#allocation8 + $0x60] sm:$0xff] %v509_v45 }
 0x17c   :  { %v493_v46 = vpop.f32.mrf.mxu1 }
 0x17d   :  { %v494_v47 = vadd.f32 %v699_v21, %v493_v46 }
 0x17f   :  { %524 = vst [vmem:[#allocation8 + $0x30] sm:$0xff] %v494_v47 }
 0x180   :  { %v510_v49 = vpop.f32.mrf.mxu3 }
 0x181   :  { %v511_v31 = vadd.f32 %v699_v21, %v510_v49 }
 0x183   :  { %531 = vst [vmem:[#allocation8 + $0x68] sm:$0xff] %v511_v31 }
 0x184   :  { %v495_v51 = vpop.f32.mrf.mxu1 }
 0x185   :  { %v496_v44 = vadd.f32 %v699_v21, %v495_v51 }
 0x187   :  { %525 = vst [vmem:[#allocation8 + $0x38] sm:$0xff] %v496_v44 }
 0x188   :  { %v513_v52 = vpop.f32.mrf.mxu3 }
 0x189   :  { %v514_v53 = vadd.f32 %v699_v21, %v513_v52 }
 0x18b   :  { %532 = vst [vmem:[#allocation8 + $0x70] sm:$0xff] %v514_v53 }
 0x190   :  { %v515_v54 = vpop.f32.mrf.mxu3 }
 0x191   :  { %v516_v55 = vadd.f32 %v699_v21, %v515_v54 }
 0x193   :  { %533 = vst [vmem:[#allocation8 + $0x78] sm:$0xff] %v516_v55 }
 0x194   :  { %546 = dma.vmem_to_hbm [thread:$0]  %s539_s10, 2048, %s541_s13, [#allocation4], %s840_s14, %s840_s14, %s841_s15  }
 0x195   :  { %832 = dma.done.wait [#allocation4], 2048  }
 0x196   :  { %833 = vsyncadd [#allocation4], 4294965248 }
 0x197   :  { %551 = vsyncpa [#allocation3], 1 }
 0x198   :  { %552 = vsyncpa [#allocation6], 1 }
 0x199   :  { %553 = vsyncpa [#allocation4], 1 }

</bundles_post_ra>
